<compile_context>
chip_gen: v6e
topology: v6e:2x2x1
jax: 0.10.0
libtpu: 0.0.40
codegen_flags: <defaults>
</compile_context>

<pallas_src>
import jax
import jax.numpy as jnp
from jax.experimental import pallas as pl
from jax.experimental.pallas import tpu as pltpu


LANES = 128
SUBLANES = 8
# ~2 MiB per input per pipeline buffer -> 8 MiB total double-buffered inputs.
TARGET_BLOCK_BYTES = 2 * 1024 * 1024


def _num_tensorcores():
    """2 on two-TensorCore chips (v7x), else 1 (v5e/v6e: split is pure overhead)."""
    try:
        dev = jax.devices()[0]
        if dev.platform != "tpu":
            return 1
        return 2 if "7" in dev.device_kind else 1
    except Exception:  # pragma: no cover - defensive
        return 1


def _make_smape_kernel(rows, tile_rows, blocks_per_core, nblocks, num_cores):
    """Kernel accumulating sum(|t - p| / (|t| + |p|)) per core (x0.5 hoisted)."""
    # Masking is only ever needed for the final logical block (ragged rows) or
    # for a clamped duplicate block when num_cores * blocks_per_core > nblocks.
    any_ragged = (rows % tile_rows != 0) or (num_cores * blocks_per_core != nblocks)

    def fold(contrib):
        # (tile_rows, 128) -> (tile_rows//8, 8, 128): the trailing (8, 128) is
        # exactly one f32 vreg, so the leading-axis sum is pure VALU adds and
        # the reshape moves no data.
        return jnp.sum(
            contrib.reshape(tile_rows // SUBLANES, SUBLANES, LANES), axis=0
        )

    def kernel(pred_ref, true_ref, out_ref, acc_ref):
        j = pl.program_id(1)

        # Reset the per-core accumulator at the start of each core's sweep.
        @pl.when(j == 0)
        def _():
            acc_ref[...] = jnp.zeros_like(acc_ref)

        p = pred_ref[...].astype(jnp.float32)
        t = true_ref[...].astype(jnp.float32)

        # x0.5 hoisted out of the kernel: accumulate |t-p| / (|t|+|p|); the
        # wrapper multiplies the final scalar by 2.
        denom = jnp.abs(t) + jnp.abs(p)
        num = jnp.abs(t - p)
        # Reciprocal goes to the EUP slot.  denom == 0 lanes produce Inf/NaN
        # which the selects below discard -- matching PyTorch's
        # `diff[denominator == 0] = 0` semantics.
        ratio = num * pl.reciprocal(denom, approx=False)

        if not any_ragged:
            # Hot path: every row of every block is valid.
            acc_ref[...] += fold(jnp.where(denom > 0.0, ratio, 0.0))
        else:
            logical_block = pl.program_id(0) * blocks_per_core + j
            needs_mask = (logical_block + 1) * tile_rows > rows

            @pl.when(jnp.logical_not(needs_mask))
            def _():
                acc_ref[...] += fold(jnp.where(denom > 0.0, ratio, 0.0))

            @pl.when(needs_mask)
            def _():
                # Only here (last logical block, or core 1's clamped duplicate
                # block) do we pay for the iota/compare/and row mask.  Rows
                # past `rows` may contain unspecified VMEM data; the select
                # discards any NaN/Inf they produce.
                row = jax.lax.broadcasted_iota(jnp.int32, (tile_rows, LANES), 0)
                valid = (logical_block * tile_rows + row) < rows
                good = (denom > 0.0) & valid
                acc_ref[...] += fold(jnp.where(good, ratio, 0.0))

        # Single cross-lane reduce, once per core, on the last step.
        @pl.when(j == pl.num_programs(1) - 1)
        def _():
            out_ref[...] = jnp.reshape(jnp.sum(acc_ref[...]), (1, 1, 1))

    return kernel


def smape(y_pred, y_true):
    """SMAPE loss matching the PyTorch module. Returns an f32 scalar."""
    assert y_pred.shape == y_true.shape
    n_true = y_pred.size  # divide by the true (unpadded) element count

    p_flat = jnp.ravel(y_pred)
    t_flat = jnp.ravel(y_true)

    # Pad (only when needed) to a multiple of 8*128 = 1024 elements so the
    # flat data views as (rows, 128) with rows % 8 == 0 (required by the
    # vreg-aligned accumulator fold).  Padded zeros give denom == 0 and so
    # contribute nothing.
    chunk = SUBLANES * LANES
    rem = n_true % chunk
    if rem:
        pad = chunk - rem
        p_flat = jnp.pad(p_flat, (0, pad))
        t_flat = jnp.pad(t_flat, (0, pad))

    rows = p_flat.size // LANES
    p2d = p_flat.reshape(rows, LANES)
    t2d = t_flat.reshape(rows, LANES)

    itemsize = p2d.dtype.itemsize
    # 4096 rows for f32, 8192 for bf16 (both multiples of the native sublane
    # tiling).  Small inputs use a single full-extent block.
    max_tile_rows = max(SUBLANES, TARGET_BLOCK_BYTES // (LANES * itemsize))
    tile_rows = rows if rows <= max_tile_rows else max_tile_rows

    nblocks = -(-rows // tile_rows)                       # ceil
    num_cores = _num_tensorcores() if nblocks > 1 else 1  # split only if useful
    blocks_per_core = -(-nblocks // num_cores)            # ceil

    if num_cores == 1:
        def in_index_map(c, j):
            return (j, 0)
    else:
        def in_index_map(c, j):
            # Clamp so the DMA never goes out of bounds; the duplicate block
            # that results when nblocks is odd is fully masked in the kernel.
            return (jnp.minimum(c * blocks_per_core + j, nblocks - 1), 0)

    n_elems = rows * LANES
    cost = pl.CostEstimate(
        flops=8 * n_elems,
        transcendentals=n_elems,
        bytes_accessed=2 * n_elems * itemsize + num_cores * 4,
    )

    partials = pl.pallas_call(
        _make_smape_kernel(rows, tile_rows, blocks_per_core, nblocks, num_cores),
        out_shape=jax.ShapeDtypeStruct((num_cores, 1, 1), jnp.float32),
        grid_spec=pltpu.PrefetchScalarGridSpec(
            num_scalar_prefetch=0,
            grid=(num_cores, blocks_per_core),
            in_specs=[
                pl.BlockSpec((tile_rows, LANES), in_index_map),
                pl.BlockSpec((tile_rows, LANES), in_index_map),
            ],
            out_specs=pl.BlockSpec((1, 1, 1), lambda c, j: (c, 0, 0)),
            scratch_shapes=[pltpu.VMEM((SUBLANES, LANES), jnp.float32)],
        ),
        compiler_params=pltpu.CompilerParams(
            # TODO(synk): on v7x, verify in a trace that the leading "parallel"
            # axis actually shards across the two TensorCores; if not, switch
            # it to pltpu.CORE_PARALLEL.
            dimension_semantics=("parallel", "arbitrary"),
        ),
        cost_estimate=cost,
    )(p2d, t2d)

    total = jnp.sum(partials)
    # x2 restores the /2 that was hoisted out of the in-kernel denominator.
    return (total * 2.0 / n_true) * 100.0


def _smape_ref(y_pred, y_true):
    """Pure-JAX reference for verification."""
    yp = y_pred.astype(jnp.float32)
    yt = y_true.astype(jnp.float32)
    denom = (jnp.abs(yt) + jnp.abs(yp)) / 2.0
    diff = jnp.where(
        denom == 0, 0.0, jnp.abs(yt - yp) / jnp.where(denom == 0, 1.0, denom)
    )
    return jnp.mean(diff) * 100.0


if __name__ == "__main__":
    key = jax.random.PRNGKey(0)
    k1, k2, k3, k4 = jax.random.split(key, 4)

    # Small NCHW-like shape (SMAPE is shape-agnostic; it only reduces).
    shape = (2, 4, 16, 16)
    y_pred = jax.random.normal(k1, shape, dtype=jnp.float32)
    y_true = jax.random.normal(k2, shape, dtype=jnp.float32)
    # Inject exact-zero pairs so the denom == 0 branch is exercised.
    y_pred = y_pred.at[0, 0, 0, :4].set(0.0)
    y_true = y_true.at[0, 0, 0, :4].set(0.0)

    out = jax.block_until_ready(smape(y_pred, y_true))
    ref = jax.block_until_ready(_smape_ref(y_pred, y_true))
    assert jnp.allclose(out, ref, rtol=1e-5, atol=1e-5), (out, ref)

    # Ragged-size test: flat size not a multiple of 128 and rows not a
    # multiple of the streaming tile, exercising the lane/sublane pad and the
    # gated last-block row mask (looser tolerance: f32 summation-order noise).
    shape2 = (4104, 131)
    y_pred2 = jax.random.normal(k3, shape2, dtype=jnp.float32)
    y_true2 = jax.random.normal(k4, shape2, dtype=jnp.float32)
    out2 = jax.block_until_ready(smape(y_pred2, y_true2))
    ref2 = jax.block_until_ready(_smape_ref(y_pred2, y_true2))
    assert jnp.allclose(out2, ref2, rtol=1e-4, atol=1e-4), (out2, ref2)

    print("KERNEL_OK")
</pallas_src>

<mosaic_0001>
module attributes {stable_mosaic.version = 11 : i64} {
  func.func @kernel(%arg0: i32, %arg1: i32, %arg2: memref<16x128xf32, #tpu.memory_space<vmem>>, %arg3: memref<16x128xf32, #tpu.memory_space<vmem>>, %arg4: memref<1x1x1xf32, #tpu.memory_space<vmem>>, %arg5: memref<8x128xf32, #tpu.memory_space<vmem>>) attributes {dimension_semantics = [#tpu.dimension_semantics<parallel>, #tpu.dimension_semantics<arbitrary>], iteration_bounds = array<i64: 1, 1>, scalar_prefetch = 0 : i64, scratch_operands = 1 : i64, tpu.core_type = #tpu.core_type<tc>, window_params = [{transform_indices = @transform_0, window_bounds = array<i64: 16, 128>}, {transform_indices = @transform_1, window_bounds = array<i64: 16, 128>}, {transform_indices = @transform_2, window_bounds = array<i64: 1, 1, 1>}]} {
    %c0_i32 = arith.constant 0 : i32
    %0 = arith.cmpi eq, %arg1, %c0_i32 : i32
    %1 = arith.extui %0 : i1 to i32
    %c0_i32_0 = arith.constant 0 : i32
    %2 = arith.cmpi ne, %1, %c0_i32_0 : i32
    scf.if %2 {
      %cst_12 = arith.constant 0.000000e+00 : f32
      %24 = vector.broadcast %cst_12 : f32 to vector<8x128xf32>
      %c0_13 = arith.constant 0 : index
      %c0_14 = arith.constant 0 : index
      %25 = vector.load %arg5[%c0_13, %c0_14] : memref<8x128xf32, #tpu.memory_space<vmem>>, vector<8x128xf32>
      tpu.vector_store %arg5[%c0_13, %c0_14], %24 {strides = array<i32>} : memref<8x128xf32, #tpu.memory_space<vmem>>, vector<8x128xf32>,
    } else {
    }
    %c0 = arith.constant 0 : index
    %c0_1 = arith.constant 0 : index
    %3 = vector.load %arg2[%c0, %c0_1] : memref<16x128xf32, #tpu.memory_space<vmem>>, vector<16x128xf32>
    %c0_2 = arith.constant 0 : index
    %c0_3 = arith.constant 0 : index
    %4 = vector.load %arg3[%c0_2, %c0_3] : memref<16x128xf32, #tpu.memory_space<vmem>>, vector<16x128xf32>
    %5 = math.absf %4 : vector<16x128xf32>
    %6 = math.absf %3 : vector<16x128xf32>
    %7 = arith.addf %5, %6 : vector<16x128xf32>
    %8 = arith.subf %4, %3 : vector<16x128xf32>
    %9 = math.absf %8 : vector<16x128xf32>
    %10 = tpu.reciprocal %7 : vector<16x128xf32> -> vector<16x128xf32>
    %11 = arith.mulf %9, %10 : vector<16x128xf32>
    %c0_4 = arith.constant 0 : index
    %c0_5 = arith.constant 0 : index
    %12 = vector.load %arg5[%c0_4, %c0_5] : memref<8x128xf32, #tpu.memory_space<vmem>>, vector<8x128xf32>
    %cst = arith.constant 0.000000e+00 : f32
    %13 = vector.broadcast %cst : f32 to vector<16x128xf32>
    %14 = arith.cmpf ogt, %7, %13 : vector<16x128xf32>
    %cst_6 = arith.constant 0.000000e+00 : f32
    %15 = vector.broadcast %cst_6 : f32 to vector<16x128xf32>
    %16 = arith.select %14, %11, %15 : vector<16x128xi1>, vector<16x128xf32>
    %17 = vector.shape_cast %16 : vector<16x128xf32> to vector<2x8x128xf32>
    %cst_7 = arith.constant dense<0.000000e+00> : vector<8x128xf32>
    %18 = vector.multi_reduction <add>, %17, %cst_7 [0] : vector<2x8x128xf32> to vector<8x128xf32>
    %19 = arith.addf %12, %18 : vector<8x128xf32>
    %c0_8 = arith.constant 0 : index
    %c0_9 = arith.constant 0 : index
    %20 = vector.load %arg5[%c0_8, %c0_9] : memref<8x128xf32, #tpu.memory_space<vmem>>, vector<8x128xf32>
    tpu.vector_store %arg5[%c0_8, %c0_9], %19 {strides = array<i32>} : memref<8x128xf32, #tpu.memory_space<vmem>>, vector<8x128xf32>,
    %c0_i32_10 = arith.constant 0 : i32
    %21 = arith.cmpi eq, %arg1, %c0_i32_10 : i32
    %22 = arith.extui %21 : i1 to i32
    %c0_i32_11 = arith.constant 0 : i32
    %23 = arith.cmpi ne, %22, %c0_i32_11 : i32
    scf.if %23 {
      %c0_12 = arith.constant 0 : index
      %c0_13 = arith.constant 0 : index
      %24 = vector.load %arg5[%c0_12, %c0_13] : memref<8x128xf32, #tpu.memory_space<vmem>>, vector<8x128xf32>
      %25 = vector.shape_cast %24 : vector<8x128xf32> to vector<1x8x128xf32>
      %cst_14 = arith.constant dense<0.000000e+00> : vector<1xf32>
      %26 = vector.multi_reduction <add>, %25, %cst_14 [1, 2] : vector<1x8x128xf32> to vector<1xf32>
      %27 = vector.shape_cast %26 : vector<1xf32> to vector<1x1x1xf32>
      %28 = vector.extract %27[0, 0, 0] : f32 from vector<1x1x1xf32>
      %29 = vector.broadcast %28 : f32 to vector<1x1x1xf32>
      %c0_15 = arith.constant 0 : index
      %c0_16 = arith.constant 0 : index
      %c0_17 = arith.constant 0 : index
      %30 = vector.load %arg4[%c0_15, %c0_16, %c0_17] : memref<1x1x1xf32, #tpu.memory_space<vmem>>, vector<1x1x1xf32>
      tpu.vector_store %arg4[%c0_15, %c0_16, %c0_17], %29 {strides = array<i32>} : memref<1x1x1xf32, #tpu.memory_space<vmem>>, vector<1x1x1xf32>,
    } else {
    }
    return
  }
  func.func @transform_0(%arg0: i32, %arg1: i32) -> (i32, i32) {
    %c0_i32 = arith.constant 0 : i32
    %c0_i32_0 = arith.constant 0 : i32
    return %arg1, %c0_i32 : i32, i32
  }
  func.func @transform_1(%arg0: i32, %arg1: i32) -> (i32, i32) {
    %c0_i32 = arith.constant 0 : i32
    %c0_i32_0 = arith.constant 0 : i32
    return %arg1, %c0_i32 : i32, i32
  }
  func.func @transform_2(%arg0: i32, %arg1: i32) -> (i32, i32, i32) {
    %c0_i32 = arith.constant 0 : i32
    %c0_i32_0 = arith.constant 0 : i32
    %c0_i32_1 = arith.constant 0 : i32
    return %arg0, %c0_i32, %c0_i32_0 : i32, i32, i32
  }
}

</mosaic_0001>

<bundles_post_ra>
// kernel: tpu_custom_call.1
= control target key start
LH: loop header
LB: loop body
LE: loop exit
PB: predicated region body
PF: predicated region fallthrough
CT: control target
= control target key end

     0   :  { %7 = vsyncpa [#allocation4], 0  ;;  %s209_s0 = inlined_call_operand.hbm [shape: f32[16,128], index: 0, kind: input, shape index: {}]   ;;  %s210_s1 = inlined_call_operand.hbm [shape: f32[16,128], index: 1, kind: input, shape index: {}]   ;;  %s211_s2 = inlined_call_operand.hbm [shape: f32[1,1,1], index: 2, kind: output, shape index: {}]  }
   0x1   :  { %8 = vsyncpa [#allocation7], 0 }
   0x2   :  { %9 = vsyncpa [#allocation5], 0  ;;  %s180_s9 = smov [#allocation3]  }
   0x3   :  { %s15_s10 = sshll.u32 %s180_s9, 4  ;;  %s16_s10 = int_to_ptr.vmem [resolvable:$true] %s15_s10 }
   0x4   :  { %s122_s11 = scalar_lea.vmem %s16_s10, 256  ;;  %p127_p1 = scmp.lt.s32.totalorder %s16_s10, %s16_s10 }
   0x5   :  { %p123_p0 = scmp.ne.s32.totalorder %s16_s10, %s122_s11  ;;  %p128_p2 = scmp.lt.s32.totalorder %s122_s11, %s122_s11 }
   0x7   :  { %p129_p3 = por %p128_p2, %p127_p1 }
   0x9   :  { %p130_p4 = pnand %p129_p3, %p123_p0 }
   0xb   :  { %133 = shalt.err (!%p130_p4)
}
   0xc   :  { %s181_s12 = smov 128   ;;  %s182_s13 = smov 8  }
   0xd   :  { %21 = dma.hbm_to_vmem [thread:$0]  %s209_s0, 256, %s16_s10, [#allocation4], %s181_s12, %s181_s12, %s182_s13  }
   0xe   :  { %s183_s16 = smov [#allocation6]  }
   0xf   :  { %s27_s17 = sshll.u32 %s183_s16, 4  ;;  %s28_s17 = int_to_ptr.vmem [resolvable:$true] %s27_s17 }
  0x10   :  { %s142_s18 = scalar_lea.vmem %s28_s17, 256  ;;  %p147_p6 = scmp.lt.s32.totalorder %s28_s17, %s28_s17 }
  0x11   :  { %p143_p5 = scmp.ne.s32.totalorder %s28_s17, %s142_s18  ;;  %p148_p7 = scmp.lt.s32.totalorder %s142_s18, %s142_s18 }
  0x13   :  { %p149_p8 = por %p148_p7, %p147_p6 }
  0x15   :  { %p150_p9 = pnand %p149_p8, %p143_p5 }
  0x17   :  { %153 = shalt.err (!%p150_p9)
}
  0x18   :  { %33 = dma.hbm_to_vmem [thread:$0]  %s210_s1, 256, %s28_s17, [#allocation7], %s181_s12, %s181_s12, %s182_s13  }
  0x19   :  { %174 = dma.done.wait [#allocation4], 256  }
  0x1a   :  { %175 = vsyncadd [#allocation4], 4294967040 }
  0x1b   :  { %176 = dma.done.wait [#allocation7], 256  }
  0x1c   :  { %177 = vsyncadd [#allocation7], 4294967040  ;;  %v45_v0 = vld [vmem:[#allocation3] sm:$0xff]  ;;  %v46_v1 = vld [vmem:[#allocation3 + $0x8] sm:$0xff]  ;;  %s184_s0 = smov [#allocation8]   ;;  %vm85_vm2 = vcmask 0  }
  0x1d   :  { %v47_v2 = vld [vmem:[#allocation6] sm:$0xff]  ;;  %v48_v3 = vld [vmem:[#allocation6 + $0x8] sm:$0xff]  ;;  %v51_v5 = vand.u32 2147483647, %v45_v0  ;;  %v52_v7 = vand.u32 2147483647, %v46_v1 }
  0x1e   :  { %v49_v4 = vand.u32 2147483647, %v47_v2  ;;  %v50_v6 = vand.u32 2147483647, %v48_v3  ;;  %v55_v10 = vsub.f32 %v47_v2, %v45_v0  ;;  %v56_v11 = vsub.f32 %v48_v3, %v46_v1  ;;  %s93_s1 = sshll.u32 %s184_s0, 4  ;;  %s94_s1 = int_to_ptr.vmem [resolvable:$true] %s93_s1 }
  0x1f   :  { %s154_s22 = scalar_lea.vmem %s94_s1, 16  ;;  %s158_s23 = scalar_lea.vmem %s94_s1, 32 }
  0x20   :  { %v53_v8 = vadd.f32 %v51_v5, %v49_v4  ;;  %v54_v9 = vadd.f32 %v52_v7, %v50_v6  ;;  %v57_v12 = vand.u32 2147483647, %v55_v10  ;;  %v58_v13 = vand.u32 2147483647, %v56_v11  ;;  %p155_p10 = scmp.ne.s32.totalorder %s94_s1, %s154_s22  ;;  %p159_p11 = scmp.lt.s32.totalorder %s94_s1, %s94_s1 }
  0x21   :  { %p160_p12 = scmp.lt.s32.totalorder %s158_s23, %s154_s22 }
  0x22   :  { %110 = vrcp.f32 %v53_v8  ;;  %vm64_vm0 = vcmp.gt.f32.partialorder %v53_v8, 0.0  ;;  %vm65_vm1 = vcmp.gt.f32.partialorder %v54_v9, 0.0 }
  0x23   :  { %112 = vrcp.f32 %v54_v9  ;;  %p161_p13 = por %p160_p12, %p159_p11 }
  0x25   :  { %p162_p0 = pnand %p161_p13, %p155_p10 }
  0x2f   :  { %v111_v14 = vpop.eup %110 }
  0x30   :  { %v113_v15 = vpop.eup %112  ;;  %v61_v16 = vmul.f32 %v111_v14, %v57_v12 }
  0x31   :  { %v62_v17 = vmul.f32 %v113_v15, %v58_v13 }
  0x32   :  { %v66_v18 = vsel %vm64_vm0, %v61_v16, 0.0 }
  0x33   :  { %v67_v19 = vsel %vm65_vm1, %v62_v17, 0.0 }
  0x34   :  { %v68_v20 = vadd.f32 %v67_v19, %v66_v18 }
  0x36   :  { %75 = vadd.xlane.f32.xlu0 %v68_v20 }
  0xbf   :  { %v76_v21 = vpop.xlane.xlu0 %75 }
  0xc0   :  { %v77_v22 = vrot.slane %v76_v21, 4 }
  0xc2   :  { %v78_v23 = vadd.f32 %v77_v22, %v76_v21 }
  0xc4   :  { %v79_v24 = vrot.slane %v78_v23, 2 }
  0xc6   :  { %v80_v25 = vadd.f32 %v79_v24, %v78_v23 }
  0xc8   :  { %v81_v26 = vrot.slane %v80_v25, 1 }
  0xca   :  { %v82_v27 = vadd.f32 %v81_v26, %v80_v25 }
  0xcc   :  { %103 = vpush %v82_v27 }
  0xfd   :  { %s104_s21 = spop %103 }
  0xfe   :  { %v84_v28 = vstv %s104_s21 }
  0xff   :  { %86 = vst.msk [vmem:[#allocation8] sm:$0x1] %vm85_vm2, %v84_v28 }
 0x100   :  { %165 = shalt.err (!%p162_p0)
}
 0x101   :  { %96 = dma.vmem_to_hbm [thread:$0]  %s94_s1, 16, %s211_s2, [#allocation5]  }
 0x102   :  { %178 = dma.done.wait [#allocation5], 16  }
 0x103   :  { %179 = vsyncadd [#allocation5], 4294967280 }
 0x104   :  { %100 = vsyncpa [#allocation4], 1 }
 0x105   :  { %101 = vsyncpa [#allocation7], 1 }
 0x106   :  { %102 = vsyncpa [#allocation5], 1 }

</bundles_post_ra>
